<compile_context>
chip_gen: v7x
topology: tpu7x:2x2x1
jax: 0.10.0
libtpu: 0.0.40
codegen_flags: <defaults>
</compile_context>

<pallas_src>
import jax
import jax.numpy as jnp
from jax.experimental import pallas as pl
from jax.experimental.pallas import tpu as pltpu

HIDDEN = 600        # fc1 output size, fixed by the module definition
HIDDEN_PAD = 640    # 5 * 128: lane-aligned padding of the hidden dim
ALPHA = 0.25        # focal-loss alpha; gamma = 2 -> explicit square below


def _round_up(x, m):
    return ((x + m - 1) // m) * m


def _make_kernel(batch, tile_b, num_tiles):
    scale = -ALPHA / float(batch)              # folds alpha, sign and the mean
    needs_mask = (num_tiles * tile_b) != batch

    def kernel(z_ref, w1_ref, b1_ref, w2_ref, b2_ref, rel_ref, part_ref):
        # fc1 + ReLU: bf16 operands on the MXU, f32 accumulation.
        h = jnp.dot(z_ref[...], w1_ref[...],
                    preferred_element_type=jnp.float32) + b1_ref[...]
        h = jnp.maximum(h, 0.0)

        # fc2, lane-dense: contract the hidden dim of the [1, Hp] bf16 weight
        # row against the hidden dim of h -> rel is [1, tile_b] (batch on lanes).
        rel = jax.lax.dot_general(
            w2_ref[...], h.astype(jnp.bfloat16),
            dimension_numbers=(((1,), (1,)), ((), ())),
            preferred_element_type=jnp.float32,
        ) + b2_ref[0, 0]
        rel_ref[...] = rel

        # BCE focal loss with target y = 1, numerically stable:
        #   log(pt)  = log_sigmoid(rel) = min(rel, 0) - log1p(exp(-|rel|))
        #   (1 - pt) = sigmoid(-rel)
        e = jnp.exp(-jnp.abs(rel))                            # in (0, 1]
        log_pt = jnp.minimum(rel, 0.0) - jnp.log1p(e)
        one_minus_pt = jnp.where(rel >= 0.0, e, 1.0) / (1.0 + e)
        per_sample = one_minus_pt * one_minus_pt * log_pt      # [1, tile_b]

        if needs_mask:  # ragged last tile: zero out padded lanes
            i = pl.program_id(0)
            lane = jax.lax.broadcasted_iota(jnp.int32, per_sample.shape, 1)
            per_sample = jnp.where(i * tile_b + lane < batch, per_sample, 0.0)

        # Per-tile partial loss (alpha/sign/mean folded into `scale`); the tiny
        # num_tiles-wide final sum happens in the wrapper, so the batch grid
        # axis carries no reduction -> it can be "parallel" (v7x megacore).
        part_ref[...] = scale * jnp.sum(per_sample, axis=-1, keepdims=True)

    return kernel


def prepare_params(w1, b1, w2, b2):
    """One-time parameter preprocessing (kept OUT of the per-call hot path):
    zero-pad hidden 600 -> 640 and the input dim to a multiple of 128 (exact:
    relu(0)=0 and the padded w2 columns are zero), cast MXU operands to bf16.
    Biases stay f32 (added after the f32 accumulation)."""
    d = w1.shape[0]
    d_pad = _round_up(d, 128)
    hp = HIDDEN_PAD - HIDDEN
    w1p = jnp.pad(w1, ((0, d_pad - d), (0, hp))).astype(jnp.bfloat16)
    b1p = jnp.pad(b1, ((0, 0), (0, hp)))
    w2p = jnp.pad(w2, ((0, 0), (0, hp))).astype(jnp.bfloat16)
    return w1p, b1p, w2p, b2


@jax.jit
def policy_network_forward(z_t, w1p, b1p, w2p, b2):
    """z_t: [B, D] f32; (w1p, b1p, w2p, b2) from prepare_params().

    Returns (relation [B, 1] f32, loss scalar f32) like the PyTorch module.
    """
    batch, d = z_t.shape
    d_pad = w1p.shape[0]

    # Hot path only touches z_t: 128-align the feature dim and cast to bf16
    # (halves the bytes streamed into the kernel).
    if d_pad != d:
        z_t = jnp.pad(z_t, ((0, 0), (0, d_pad - d)))
    z_bf = z_t.astype(jnp.bfloat16)

    if batch <= 128:
        tile_b = batch
    else:
        tile_b = 512 if batch >= 512 else (256 if batch >= 256 else 128)
    num_tiles = pl.cdiv(batch, tile_b)

    kernel = _make_kernel(batch, tile_b, num_tiles)

    rel_row, partials = pl.pallas_call(
        kernel,
        grid=(num_tiles,),
        out_shape=(
            jax.ShapeDtypeStruct((1, batch), jnp.float32),      # relation, lane-dense
            jax.ShapeDtypeStruct((num_tiles, 1), jnp.float32),  # per-tile loss partials
        ),
        in_specs=[
            pl.BlockSpec((tile_b, d_pad), lambda i: (i, 0)),        # z batch tile (bf16)
            pl.BlockSpec((d_pad, HIDDEN_PAD), lambda i: (0, 0)),    # w1 (bf16, VMEM-resident)
            pl.BlockSpec((1, HIDDEN_PAD), lambda i: (0, 0)),        # b1 (f32)
            pl.BlockSpec((1, HIDDEN_PAD), lambda i: (0, 0)),        # w2 row (bf16)
            pl.BlockSpec(memory_space=pltpu.MemorySpace.SMEM),      # b2 scalar
        ],
        out_specs=(
            pl.BlockSpec((1, tile_b), lambda i: (0, i)),
            pl.BlockSpec((1, 1), lambda i: (i, 0)),
        ),
        compiler_params=pltpu.CompilerParams(
            # No cross-tile carry anymore -> batch axis is parallel (megacore).
            dimension_semantics=("parallel",),
        ),
    )(z_bf, w1p, b1p, w2p, b2)

    loss = jnp.sum(partials)          # trivial follow-up reduce over num_tiles
    return rel_row.reshape(batch, 1), loss


def init_params(key, input_size):
    """Deterministic nn.Linear-style init: U(-1/sqrt(fan_in), 1/sqrt(fan_in))."""
    k1, k2, k3, k4 = jax.random.split(key, 4)
    bound1 = 1.0 / jnp.sqrt(jnp.float32(input_size))
    bound2 = 1.0 / jnp.sqrt(jnp.float32(HIDDEN))
    w1 = jax.random.uniform(k1, (input_size, HIDDEN), jnp.float32, -bound1, bound1)
    b1 = jax.random.uniform(k2, (1, HIDDEN), jnp.float32, -bound1, bound1)
    w2 = jax.random.uniform(k3, (1, HIDDEN), jnp.float32, -bound2, bound2)
    b2 = jax.random.uniform(k4, (1, 1), jnp.float32, -bound2, bound2)
    return w1, b1, w2, b2


if __name__ == "__main__":
    key = jax.random.PRNGKey(0)
    k_in, k_param = jax.random.split(key)

    batch, input_size = 8, 32
    z_t = jax.random.normal(k_in, (batch, input_size), jnp.float32)
    w1, b1, w2, b2 = init_params(k_param, input_size)
    params = prepare_params(w1, b1, w2, b2)

    relation, loss = policy_network_forward(z_t, *params)
    jax.block_until_ready((relation, loss))

    # Matched-precision reference (bf16 MXU operands, f32 accumulation).
    z_bf = z_t.astype(jnp.bfloat16)
    h_ref = jnp.maximum(
        jnp.dot(z_bf, w1.astype(jnp.bfloat16),
                preferred_element_type=jnp.float32) + b1, 0.0)
    rel_ref = jnp.dot(h_ref.astype(jnp.bfloat16), w2.astype(jnp.bfloat16).T,
                      preferred_element_type=jnp.float32) + b2          # [B, 1]
    loss_ref = jnp.mean(-ALPHA * jax.nn.sigmoid(-rel_ref) ** 2
                        * jax.nn.log_sigmoid(rel_ref))

    assert relation.shape == (batch, 1)
    assert jnp.allclose(relation, rel_ref, atol=1e-4, rtol=1e-4)
    assert jnp.allclose(loss, loss_ref, atol=1e-4, rtol=1e-4)

    # Loose check against full-f32 math (documents the bf16 accuracy budget).
    h32 = jnp.maximum(z_t @ w1 + b1, 0.0)
    rel32 = h32 @ w2.T + b2
    loss32 = jnp.mean(-ALPHA * jax.nn.sigmoid(-rel32) ** 2
                      * jax.nn.log_sigmoid(rel32))
    assert jnp.allclose(relation, rel32, atol=5e-2, rtol=5e-2)
    assert jnp.allclose(loss, loss32, atol=5e-2, rtol=5e-2)

    print("KERNEL_OK")
</pallas_src>

<mosaic_0001>
module attributes {stable_mosaic.version = 11 : i64} {
  func.func @kernel(%arg0: i32, %arg1: memref<8x128xbf16, #tpu.memory_space<vmem>>, %arg2: memref<128x640xbf16, #tpu.memory_space<vmem>>, %arg3: memref<1x640xf32, #tpu.memory_space<vmem>>, %arg4: memref<1x640xbf16, #tpu.memory_space<vmem>>, %arg5: memref<1x1xf32, #tpu.memory_space<smem>>, %arg6: memref<1x8xf32, #tpu.memory_space<vmem>>, %arg7: memref<1x1xf32, #tpu.memory_space<vmem>>) attributes {dimension_semantics = [#tpu.dimension_semantics<parallel>], iteration_bounds = array<i64: 1>, scalar_prefetch = 0 : i64, scratch_operands = 0 : i64, tpu.core_type = #tpu.core_type<tc>, window_params = [{transform_indices = @transform_0, window_bounds = array<i64: 8, 128>}, {pipeline_mode = #tpu.pipeline_mode<synchronous>, transform_indices = @transform_1, window_bounds = array<i64: 128, 640>}, {pipeline_mode = #tpu.pipeline_mode<synchronous>, transform_indices = @transform_2, window_bounds = array<i64: 1, 640>}, {pipeline_mode = #tpu.pipeline_mode<synchronous>, transform_indices = @transform_3, window_bounds = array<i64: 1, 640>}, {transform_indices = @transform_4, window_bounds = array<i64: 1, 1>}, {transform_indices = @transform_5, window_bounds = array<i64: 1, 8>}, {transform_indices = @transform_6, window_bounds = array<i64: 1, 1>}]} {
    %c0 = arith.constant 0 : index
    %c0_0 = arith.constant 0 : index
    %0 = vector.load %arg1[%c0, %c0_0] : memref<8x128xbf16, #tpu.memory_space<vmem>>, vector<8x128xbf16>
    %c0_1 = arith.constant 0 : index
    %c0_2 = arith.constant 0 : index
    %1 = vector.load %arg2[%c0_1, %c0_2] : memref<128x640xbf16, #tpu.memory_space<vmem>>, vector<128x640xbf16>
    %cst = arith.constant dense<0.000000e+00> : vector<8x640xf32>
    %2 = tpu.matmul %0, %1, %cst {dimension_numbers = #tpu.dot_dimension_numbers<[1], [0], [0], [1], [0, 0, 1, 1], [], []>} : vector<8x128xbf16>, vector<128x640xbf16>, vector<8x640xf32> -> vector<8x640xf32>
    %c0_3 = arith.constant 0 : index
    %c0_4 = arith.constant 0 : index
    %3 = vector.load %arg3[%c0_3, %c0_4] : memref<1x640xf32, #tpu.memory_space<vmem>>, vector<1x640xf32>
    %4 = vector.broadcast %3 : vector<1x640xf32> to vector<8x640xf32>
    %5 = arith.addf %2, %4 : vector<8x640xf32>
    %cst_5 = arith.constant 0.000000e+00 : f32
    %6 = vector.broadcast %cst_5 : f32 to vector<8x640xf32>
    %7 = arith.maximumf %5, %6 : vector<8x640xf32>
    %c0_6 = arith.constant 0 : index
    %c0_7 = arith.constant 0 : index
    %8 = vector.load %arg4[%c0_6, %c0_7] : memref<1x640xbf16, #tpu.memory_space<vmem>>, vector<1x640xbf16>
    %9 = arith.truncf %7 : vector<8x640xf32> to vector<8x640xbf16>
    %cst_8 = arith.constant dense<0.000000e+00> : vector<1x8xf32>
    %10 = tpu.matmul %8, %9, %cst_8 {dimension_numbers = #tpu.dot_dimension_numbers<[1], [1], [0], [0], [0, 0, 1, 0], [], []>} : vector<1x640xbf16>, vector<8x640xbf16>, vector<1x8xf32> -> vector<1x8xf32>
    %c0_9 = arith.constant 0 : index
    %c0_10 = arith.constant 0 : index
    %11 = memref.load %arg5[%c0_9, %c0_10] : memref<1x1xf32, #tpu.memory_space<smem>>
    %12 = vector.broadcast %11 : f32 to vector<1x8xf32>
    %13 = arith.addf %10, %12 : vector<1x8xf32>
    %c0_11 = arith.constant 0 : index
    %c0_12 = arith.constant 0 : index
    %14 = vector.load %arg6[%c0_11, %c0_12] : memref<1x8xf32, #tpu.memory_space<vmem>>, vector<1x8xf32>
    tpu.vector_store %arg6[%c0_11, %c0_12], %13 {strides = array<i32>} : memref<1x8xf32, #tpu.memory_space<vmem>>, vector<1x8xf32>,
    %15 = math.absf %13 : vector<1x8xf32>
    %cst_13 = arith.constant 0.000000e+00 : f32
    %16 = vector.broadcast %cst_13 : f32 to vector<1x8xf32>
    %17 = arith.subf %16, %15 : vector<1x8xf32>
    %18 = math.exp %17 : vector<1x8xf32>
    %cst_14 = arith.constant 0.000000e+00 : f32
    %19 = vector.broadcast %cst_14 : f32 to vector<1x8xf32>
    %20 = arith.minimumf %13, %19 : vector<1x8xf32>
    %21 = math.log1p %18 : vector<1x8xf32>
    %22 = arith.subf %20, %21 : vector<1x8xf32>
    %cst_15 = arith.constant 0.000000e+00 : f32
    %23 = vector.broadcast %cst_15 : f32 to vector<1x8xf32>
    %24 = arith.cmpf oge, %13, %23 : vector<1x8xf32>
    %cst_16 = arith.constant 1.000000e+00 : f32
    %25 = vector.broadcast %cst_16 : f32 to vector<1x8xf32>
    %26 = arith.select %24, %18, %25 : vector<1x8xi1>, vector<1x8xf32>
    %cst_17 = arith.constant 1.000000e+00 : f32
    %27 = vector.broadcast %cst_17 : f32 to vector<1x8xf32>
    %28 = arith.addf %27, %18 : vector<1x8xf32>
    %29 = arith.divf %26, %28 : vector<1x8xf32>
    %30 = arith.mulf %29, %29 : vector<1x8xf32>
    %31 = arith.mulf %30, %22 : vector<1x8xf32>
    %cst_18 = arith.constant dense<0.000000e+00> : vector<1xf32>
    %32 = vector.multi_reduction <add>, %31, %cst_18 [1] : vector<1x8xf32> to vector<1xf32>
    %33 = vector.shape_cast %32 : vector<1xf32> to vector<1x1xf32>
    %cst_19 = arith.constant -3.125000e-02 : f32
    %34 = vector.broadcast %cst_19 : f32 to vector<1x1xf32>
    %35 = arith.mulf %34, %33 : vector<1x1xf32>
    %c0_20 = arith.constant 0 : index
    %c0_21 = arith.constant 0 : index
    %36 = vector.load %arg7[%c0_20, %c0_21] : memref<1x1xf32, #tpu.memory_space<vmem>>, vector<1x1xf32>
    tpu.vector_store %arg7[%c0_20, %c0_21], %35 {strides = array<i32>} : memref<1x1xf32, #tpu.memory_space<vmem>>, vector<1x1xf32>,
    return
  }
  func.func @transform_0(%arg0: i32) -> (i32, i32) {
    %c0_i32 = arith.constant 0 : i32
    %c0_i32_0 = arith.constant 0 : i32
    return %arg0, %c0_i32 : i32, i32
  }
  func.func @transform_1(%arg0: i32) -> (i32, i32) {
    %c0_i32 = arith.constant 0 : i32
    %c0_i32_0 = arith.constant 0 : i32
    %c0_i32_1 = arith.constant 0 : i32
    return %c0_i32, %c0_i32_0 : i32, i32
  }
  func.func @transform_2(%arg0: i32) -> (i32, i32) {
    %c0_i32 = arith.constant 0 : i32
    %c0_i32_0 = arith.constant 0 : i32
    %c0_i32_1 = arith.constant 0 : i32
    return %c0_i32, %c0_i32_0 : i32, i32
  }
  func.func @transform_3(%arg0: i32) -> (i32, i32) {
    %c0_i32 = arith.constant 0 : i32
    %c0_i32_0 = arith.constant 0 : i32
    %c0_i32_1 = arith.constant 0 : i32
    return %c0_i32, %c0_i32_0 : i32, i32
  }
  func.func @transform_4(%arg0: i32) -> (i32, i32) {
    %c0_i32 = arith.constant 0 : i32
    %c0_i32_0 = arith.constant 0 : i32
    %c0_i32_1 = arith.constant 0 : i32
    return %c0_i32, %c0_i32_0 : i32, i32
  }
  func.func @transform_5(%arg0: i32) -> (i32, i32) {
    %c0_i32 = arith.constant 0 : i32
    %c0_i32_0 = arith.constant 0 : i32
    return %c0_i32, %arg0 : i32, i32
  }
  func.func @transform_6(%arg0: i32) -> (i32, i32) {
    %c0_i32 = arith.constant 0 : i32
    %c0_i32_0 = arith.constant 0 : i32
    return %arg0, %c0_i32 : i32, i32
  }
}

</mosaic_0001>

<bundles_post_ra>
// kernel: policy_network_forward.1
= control target key start
LH: loop header
LB: loop body
LE: loop exit
PB: predicated region body
PF: predicated region fallthrough
CT: control target
= control target key end

     0   :  { %13 = vsyncpa [#allocation4], 0  ;;  %s1020_s0 = inlined_call_operand.vmem [shape: bf16[8,128], index: 0, kind: input, shape index: {}]   ;;  %s1021_s1 = inlined_call_operand.hbm [shape: bf16[128,640], index: 1, kind: input, shape index: {}]   ;;  %s1022_s2 = inlined_call_operand.vmem [shape: f32[1,640], index: 2, kind: input, shape index: {}]   ;;  %s1023_s3 = inlined_call_operand.vmem [shape: bf16[1,640], index: 3, kind: input, shape index: {}]   ;;  %s1024_s4 = inlined_call_operand.<no memory space> [shape: f32[1,1], index: 4, kind: input, shape index: {}]   ;;  %s1025_s5 = inlined_call_operand.hbm [shape: f32[1,8], index: 5, kind: output, shape index: {0}]   ;;  %s1026_s6 = inlined_call_operand.hbm [shape: f32[1,1], index: 6, kind: output, shape index: {1}]  }
   0x1   :  { %14 = vsyncpa [#allocation5], 0 }
   0x2   :  { %15 = vsyncpa [#allocation8], 0  ;;  %s913_s21 = smov [#allocation3]   ;;  %s841_s25 = scalar_lea.hbm %s1021_s1, 5120 }
   0x3   :  { %s23_s22 = sshll.u32 %s913_s21, 4  ;;  %p842_p0 = scmp.ne.s32.totalorder %s1021_s1, %s841_s25  ;;  %s24_s22 = int_to_ptr.vmem [resolvable:$true] %s23_s22 }
   0x4   :  { %p845_p1 = scmp.lt.u32.totalorder %s841_s25, %s1021_s1 }
   0x6   :  { %p847_p2 = pnand %p845_p1, %p842_p0 }
   0x8   :  { %850 = shalt.err (!%p847_p2)
}
   0x9   :  { %s851_s30 = scalar_lea.vmem %s24_s22, 5120  ;;  %p856_p4 = scmp.lt.s32.totalorder %s24_s22, %s24_s22 }
   0xa   :  { %p852_p3 = scmp.ne.s32.totalorder %s24_s22, %s851_s30  ;;  %p857_p5 = scmp.lt.s32.totalorder %s851_s30, %s851_s30 }
   0xc   :  { %p858_p6 = por %p857_p5, %p856_p4 }
   0xe   :  { %p859_p7 = pnand %p858_p6, %p852_p3 }
  0x10   :  { %862 = shalt.err (!%p859_p7)
}
  0x11   :  { %s914_s7 = smov 320   ;;  %s915_s8 = smov 20  }
  0x12   :  { %29 = dma.hbm_to_vmem [thread:$0]  %s1021_s1, 5120, %s24_s22, [#allocation4], %s914_s7, %s914_s7, %s915_s8  }
  0x13   :  { %907 = dma.done.wait [#allocation4], 5120  }
  0x14   :  { %908 = vsyncadd [#allocation4], 4294962176  ;;  %v916_v0 = vmov 0   ;;  %v778_v1 = vld [vmem:[#allocation3 + $0x4] ss:$20 sps:$4 sm:$0xff]   ;;  %v917_v34 = vmov 0.0   ;;  %v91_v43 = vlaneseq }
  0x15   :  { %356 = vmatprep.mubr.bf16.mxu0 %v916_v0  ;;  %397 = vmatprep.mubr.bf16.mxu1 %v916_v0  ;;  %v780_v2 = vld [vmem:[#allocation3] ss:$20 sps:$4 sm:$0xff]   ;;  %v783_v4 = vld [vmem:[#allocation3 + $0x28] ss:$20 sps:$4 sm:$0xff]   ;;  %v786_v7 = vld [vmem:[#allocation3 + $0x50] ss:$20 sps:$4 sm:$0xff]  }
  0x16   :  { %324 = vmatprep.subr.bf16.mxu0 %v778_v1  ;;  %v781_v3 = vld [vmem:[#allocation3 + $0x2c] ss:$20 sps:$4 sm:$0xff]   ;;  %v784_v5 = vld [vmem:[#allocation3 + $0x54] ss:$20 sps:$4 sm:$0xff]   ;;  %v787_v8 = vld [vmem:[#allocation3 + $0x7c] ss:$20 sps:$4 sm:$0xff]  }
  0x17   :  { %325 = vmatpush1.bf16.msra.mxu0 %v780_v2  ;;  %v790_v6 = vld [vmem:[#allocation3 + $0xc] ss:$20 sps:$4 sm:$0xff]   ;;  %v794_v9 = vld [vmem:[#allocation3 + $0x8] ss:$20 sps:$4 sm:$0xff]   ;;  %v800_v12 = vld [vmem:[#allocation3 + $0x30] ss:$20 sps:$4 sm:$0xff]  }
  0x18   :  { %326 = vmatprep.subr.bf16.mxu0 %v781_v3  ;;  %365 = vmatprep.subr.bf16.mxu1 %v790_v6  ;;  %v796_v10 = vld [vmem:[#allocation3 + $0x34] ss:$20 sps:$4 sm:$0xff]   ;;  %v789_v11 = vld [vmem:[#allocation3 + $0x78] ss:$20 sps:$4 sm:$0xff]   ;;  %v802_v13 = vld [vmem:[#allocation3 + $0x5c] ss:$20 sps:$4 sm:$0xff]  }
  0x19   :  { %366 = vmatpush1.bf16.msra.mxu1 %v794_v9  ;;  %v792_v14 = vld [vmem:[#allocation3 + $0xa4] ss:$20 sps:$4 sm:$0xff]   ;;  %v795_v17 = vld [vmem:[#allocation3 + $0xa0] ss:$20 sps:$4 sm:$0xff]   ;;  %v801_v21 = vld [vmem:[#allocation3 + $0xc8] ss:$20 sps:$4 sm:$0xff]  }
  0x1a   :  { %367 = vmatprep.subr.bf16.mxu1 %v796_v10  ;;  %v806_v15 = vld [vmem:[#allocation3 + $0x58] ss:$20 sps:$4 sm:$0xff]   ;;  %v812_v19 = vld [vmem:[#allocation3 + $0x80] ss:$20 sps:$4 sm:$0xff]   ;;  %v816_v23 = vld [vmem:[#allocation3 + $0xa8] ss:$20 sps:$4 sm:$0xff]  }
  0x1b   :  { %327 = vmatpush1.bf16.msra.mxu0 %v783_v4  ;;  %v808_v16 = vld [vmem:[#allocation3 + $0x84] ss:$20 sps:$4 sm:$0xff]   ;;  %v798_v18 = vld [vmem:[#allocation3 + $0xcc] ss:$20 sps:$4 sm:$0xff]   ;;  %v804_v22 = vld [vmem:[#allocation3 + $0xf4] ss:$20 sps:$4 sm:$0xff]  }
  0x1c   :  { %328 = vmatprep.subr.bf16.mxu0 %v784_v5  ;;  %v814_v20 = vld [vmem:[#allocation3 + $0xac] ss:$20 sps:$4 sm:$0xff]   ;;  %v818_v24 = vld [vmem:[#allocation3 + $0xd4] ss:$20 sps:$4 sm:$0xff]   ;;  %v807_v25 = vld [vmem:[#allocation3 + $0xf0] ss:$20 sps:$4 sm:$0xff]  }
  0x1d   :  { %368 = vmatpush1.bf16.msra.mxu1 %v800_v12  ;;  %v810_v26 = vld [vmem:[#allocation3 + $0x11c] ss:$20 sps:$4 sm:$0xff]   ;;  %v813_v29 = vld [vmem:[#allocation3 + $0x118] ss:$20 sps:$4 sm:$0xff]   ;;  %v40_v32 = vld [vmem:[%s1020_s0] sm:$0xf] }
  0x1e   :  { %369 = vmatprep.subr.bf16.mxu1 %v802_v13  ;;  %v820_v27 = vld [vmem:[#allocation3 + $0xd0] ss:$20 sps:$4 sm:$0xff]   ;;  %v824_v30 = vld [vmem:[#allocation3 + $0xf8] ss:$20 sps:$4 sm:$0xff]   ;;  %v828_v35 = vld [vmem:[#allocation3 + $0x120] ss:$20 sps:$4 sm:$0xff]  }
  0x1f   :  { %329 = vmatpush1.bf16.msra.mxu0 %v786_v7  ;;  %v822_v28 = vld [vmem:[#allocation3 + $0xfc] ss:$20 sps:$4 sm:$0xff]   ;;  %v826_v31 = vld [vmem:[#allocation3 + $0x124] ss:$20 sps:$4 sm:$0xff]   ;;  %vm918_vm0 = vmmov 0   ;;  %v92_v46 = vshrl.u32 %v91_v43, 7 }
  0x20   :  { %330 = vmatprep.subr.bf16.mxu0 %v787_v8  ;;  %v817_v33 = vld [vmem:[#allocation3 + $0x10] ss:$20 sps:$4 sm:$0xff]   ;;  %v821_v36 = vld [vmem:[#allocation3 + $0x38] ss:$20 sps:$4 sm:$0xff]   ;;  %v825_v37 = vld [vmem:[#allocation3 + $0x60] ss:$20 sps:$4 sm:$0xff]  }
  0x21   :  { %370 = vmatpush1.bf16.msra.mxu1 %v806_v15  ;;  %v829_v38 = vld [vmem:[#allocation3 + $0x88] ss:$20 sps:$4 sm:$0xff]   ;;  %v830_v39 = vld [vmem:[#allocation3 + $0xb0] ss:$20 sps:$4 sm:$0xff]   ;;  %v831_v40 = vld [vmem:[#allocation3 + $0xd8] ss:$20 sps:$4 sm:$0xff]  }
  0x22   :  { %371 = vmatprep.subr.bf16.mxu1 %v808_v16  ;;  %v832_v41 = vld [vmem:[#allocation3 + $0x100] ss:$20 sps:$4 sm:$0xff]   ;;  %v833_v42 = vld [vmem:[#allocation3 + $0x128] ss:$20 sps:$4 sm:$0xff]   ;;  %v919_v44 = vmov 1966171168  }
  0x23   :  { %331 = vmatpush1.bf16.msra.mxu0 %v789_v11  ;;  %v462_v45 = vunpack.c.l.s4 %v919_v44  ;;  %v451_v48 = vld [vmem:[%s1023_s3] sm:$0x1f]  ;;  %v93_v57 = vsub.s32 0, %v92_v46  ;;  %v97_v59 = vsub.s32 1, %v92_v46  ;;  %v101_v62 = vsub.s32 2, %v92_v46 }
  0x24   :  { %332 = vmatprep.subr.bf16.mxu0 %v792_v14  ;;  %v460_v54 = vcombine.high %v451_v48, %v451_v48  ;;  %v89_v58 = vld [vmem:[%s1022_s2] sm:$0x1f]  ;;  %v105_v0 = vsub.s32 3, %v92_v46  ;;  %vm624_vm1 = vcmask 57344  }
  0x25   :  { %372 = vmatpush1.bf16.msra.mxu1 %v812_v19  ;;  %v463_v47 = vunpack.c.0.s8 %v462_v45  ;;  %v94_v60 = vrot.slane %v89_v58, %v93_v57  ;;  %v98_v61 = vrot.slane %v89_v58, %v97_v59  ;;  %v102_v7 = vrot.slane %v89_v58, %v101_v62 }
  0x26   :  { %373 = vmatprep.subr.bf16.mxu1 %v814_v20  ;;  %v106_v9 = vrot.slane %v89_v58, %v105_v0 }
  0x27   :  { %333 = vmatpush1.bf16.msra.mxu0 %v795_v17  ;;  %v466_v49 = vsub.s32 %v463_v47, %v92_v46 }
  0x28   :  { %334 = vmatprep.subr.bf16.mxu0 %v798_v18 }
  0x29   :  { %374 = vmatpush1.bf16.msra.mxu1 %v816_v23  ;;  %v467_v50 = vrot.slane %v451_v48, %v466_v49  ;;  %v474_v55 = vrot.slane %v460_v54, %v466_v49 }
  0x2a   :  { %375 = vmatprep.subr.bf16.mxu1 %v818_v24  ;;  %v109_v24 = vsub.s32 4, %v92_v46 }
  0x2b   :  { %335 = vmatpush1.bf16.msra.mxu0 %v801_v21  ;;  %v475_v51 = vcombine.high %v467_v50, %v467_v50  ;;  %v482_v52 = vrot.slane %v467_v50, %v466_v49  ;;  %v489_v56 = vrot.slane %v474_v55, %v466_v49 }
  0x2c   :  { %336 = vmatprep.subr.bf16.mxu0 %v804_v22 }
  0x2d   :  { %376 = vmatpush1.bf16.msra.mxu1 %v820_v27  ;;  %v496_v53 = vrot.slane %v475_v51, %v466_v49  ;;  %v497_v23 = vcombine.high %v482_v52, %v482_v52 }
  0x2e   :  { %377 = vmatprep.subr.bf16.mxu1 %v822_v28 }
  0x2f   :  { %337 = vmatpush1.bf16.msra.mxu0 %v807_v25  ;;  %v498_v22 = vcombine.high %v496_v53, %v496_v53  ;;  %v110_v25 = vrot.slane %v89_v58, %v109_v24 }
  0x30   :  { %338 = vmatprep.subr.bf16.mxu0 %v810_v26 }
  0x31   :  { %378 = vmatpush1.bf16.msra.mxu1 %v824_v30 }
  0x32   :  { %379 = vmatprep.subr.bf16.mxu1 %v826_v31 }
  0x33   :  { %339 = vmatpush1.bf16.msra.mxu0 %v813_v29 }
  0x34   :  { %734 = vmatprep.subr.bf16.mxu0 %v917_v34 }
  0x35   :  { %380 = vmatpush1.bf16.msra.mxu1 %v828_v35 }
  0x36   :  { %357 = vmatmul.mubr.bf16.vlgmr.msra.gmra.mrb[0].mxu0 %v40_v32 }
  0x37   :  { %735 = vmatpush3.bf16.msra.mxu0 %v817_v33  ;;  %750 = vmatprep.mubr.msk.bf16.mxu0 %vm918_vm0, %v917_v34  ;;  %v458_v33 = vstv %s1024_s4  ;;  %s920_s4 = smov [#allocation6]  }
  0x38   :  { %736 = vmatprep.subr.bf16.mxu0 %v917_v34  ;;  %398 = vmatmul.mubr.bf16.vlgmr.msra.gmra.mrb[0].mxu1 %v40_v32  ;;  %s660_s15 = sshll.u32 %s920_s4, 4  ;;  %s661_s15 = int_to_ptr.vmem [resolvable:$true] %s660_s15 }
  0x39   :  { %536 = vmatprep.mubr.bf16.mxu1 %v496_v53  ;;  %s863_s16 = scalar_lea.vmem %s661_s15, 16  ;;  %s867_s17 = scalar_lea.vmem %s661_s15, 32 }
  0x3a   :  { %p864_p8 = scmp.ne.s32.totalorder %s661_s15, %s863_s16  ;;  %p868_p9 = scmp.lt.s32.totalorder %s661_s15, %s661_s15 }
  0x3b   :  { %737 = vmatpush3.bf16.msra.mxu0 %v821_v36  ;;  %p869_p10 = scmp.lt.s32.totalorder %s867_s17, %s863_s16 }
  0x3c   :  { %738 = vmatprep.subr.bf16.mxu0 %v917_v34 }
  0x3d   :  { %p870_p11 = por %p869_p10, %p868_p9 }
  0x3f   :  { %739 = vmatpush3.bf16.msra.mxu0 %v825_v37  ;;  %p871_p12 = pnand %p870_p11, %p864_p8 }
  0x40   :  { %740 = vmatprep.subr.bf16.mxu0 %v917_v34 }
  0x43   :  { %741 = vmatpush3.bf16.msra.mxu0 %v829_v38 }
  0x44   :  { %742 = vmatprep.subr.bf16.mxu0 %v917_v34 }
  0x47   :  { %743 = vmatpush3.bf16.msra.mxu0 %v830_v39 }
  0x48   :  { %744 = vmatprep.subr.bf16.mxu0 %v917_v34 }
  0x4b   :  { %745 = vmatpush3.bf16.msra.mxu0 %v831_v40 }
  0x4c   :  { %746 = vmatprep.subr.bf16.mxu0 %v917_v34 }
  0x4f   :  { %747 = vmatpush3.bf16.msra.mxu0 %v832_v41 }
  0x50   :  { %748 = vmatprep.subr.bf16.mxu0 %v917_v34 }
  0x53   :  { %749 = vmatpush3.bf16.msra.mxu0 %v833_v42 }
  0x56   :  { %751 = vmatmul.mubr.bf16.vlgmr.msra.gmra.mrb[4].mxu0 %v40_v32 }
 0x109   :  { %v358_v63 = vpop.f32.mrb[0].mxu0 }
 0x10a   :  { %v359_v1 = vadd.f32 %v358_v63, %v94_v60  ;;  %v360_v2 = vpop.f32.mrb[1].mxu0 }
 0x10b   :  { %v361_v3 = vadd.f32 %v360_v2, %v98_v61  ;;  %v362_v4 = vpop.f32.mrb[2].mxu0  ;;  %v399_v12 = vpop.f32.mrb[0].mxu1 }
 0x10c   :  { %v446_v5 = vmax.f32 %v359_v1, 0.0  ;;  %v363_v6 = vpop.f32.mrb[3].mxu0  ;;  %v400_v13 = vadd.f32 %v399_v12, %v102_v7  ;;  %v401_v14 = vpop.f32.mrb[1].mxu1 }
 0x10d   :  { %v447_v8 = vmax.f32 %v361_v3, 0.0  ;;  %v402_v15 = vadd.f32 %v401_v14, %v106_v9  ;;  %v403_v16 = vpop.f32.mrb[2].mxu1 }
 0x10e   :  { %v452_v10 = vpack.c.bf16 %v446_v5, %v446_v5  ;;  %v448_v17 = vmax.f32 %v400_v13, 0.0  ;;  %v404_v18 = vpop.f32.mrb[3].mxu1 }
 0x10f   :  { %v453_v11 = vpack.c.bf16 %v447_v8, %v447_v8  ;;  %v449_v19 = vmax.f32 %v402_v15, 0.0 }
 0x110   :  { %v454_v21 = vpack.c.bf16 %v448_v17, %v448_v17 }
 0x111   :  { %504 = vmatprep.subr.bf16.mxu1 %v453_v11  ;;  %v455_v20 = vpack.c.bf16 %v449_v19, %v449_v19 }
 0x112   :  { %505 = vmatpush1.bf16.xpose.msra.mxu1 %v452_v10 }
 0x113   :  { %544 = vmatprep.subr.bf16.mxu1 %v455_v20 }
 0x119   :  { %537 = vmatmul.mubr.bf16.vlgmr.msra.gmra.mrb[4].mxu1 %v482_v52 }
 0x11a   :  { %545 = vmatpush1.bf16.xpose.msra.mxu1 %v454_v21  ;;  %576 = vmatprep.mubr.bf16.mxu1 %v498_v22 }
 0x11b   :  { %754 = vmatprep.subr.bf16.mxu1 %v917_v34 }
 0x125   :  { %577 = vmatmul.mubr.bf16.vlgmr.msra.gmra.mrb[4].mxu1 %v497_v23 }
 0x126   :  { %756 = vmatprep.mubr.msk.bf16.mxu1 %vm918_vm0, %v917_v34 }
 0x129   :  { %v440_v26 = vpop.f32.mrb[4].mxu0 }
 0x12a   :  { %v441_v27 = vadd.f32 %v440_v26, %v110_v25  ;;  %v752_v28 = vpop.f32.mrb[5].mxu0 }
 0x12b   :  { %v443_v29 = vpop.f32.mrb[6].mxu0 }
 0x12c   :  { %v450_v30 = vmax.f32 %v441_v27, 0.0  ;;  %v753_v31 = vpop.f32.mrb[7].mxu0 }
 0x12e   :  { %v456_v32 = vpack.c.bf16 %v450_v30, %v450_v30 }
 0x130   :  { %755 = vmatpush3.bf16.xpose.msra.mxu1 %v456_v32 }
 0x137   :  { %757 = vmatmul.mubr.bf16.vlgmr.msra.gmra.mrb[4].mxu1 %v489_v56 }
 0x20a   :  { %v618_v35 = vpop.f32.mrb[4].mxu1 }
 0x20b   :  { %v760_v36 = vadd.f32 %v618_v35, %v458_v33  ;;  %v758_v37 = vpop.f32.mrb[5].mxu1 }
 0x20c   :  { %v621_v38 = vpop.f32.mrb[6].mxu1 }
 0x20d   :  { %v626_v39 = vand.u32 2147483647, %v760_v36  ;;  %v759_v34 = vpop.f32.mrb[7].mxu1  ;;  %625 = vst.msk [vmem:[#allocation6] sm:$0x1] %vm624_vm1, %v760_v36  ;;  %vm641_vm2 = vcmp.ge.f32.partialorder %v760_v36, 0.0 }
 0x20e   :  { %v630_v52 = vmin.f32 %v760_v36, 0.0 }
 0x20f   :  { %v627_v40 = vsub.f32 0.0, %v626_v39 }
 0x211   :  { %v628_v41 = vmul.f32 1.442695, %v627_v40 }
 0x213   :  { %835 = vpow2.f32 %v628_v41 }
 0x21d   :  { %v836_v42 = vpop.eup %835 }
 0x21e   :  { %v631_v43 = vadd.f32 1.0, %v836_v42  ;;  %v634_v44 = vmul.f32 -0.5, %v836_v42  ;;  %v637_v46 = vand.u32 2147483647, %v836_v42  ;;  %v642_v51 = vsel %vm641_vm2, %v836_v42, 1.0 }
 0x220   :  { %837 = vlog2.f32 %v631_v43  ;;  %v635_v45 = vadd.f32 1.0, %v634_v44  ;;  %vm638_vm3 = vcmp.lt.f32.partialorder %v637_v46, 0.0004427343 }
 0x221   :  { %839 = vrcp.f32 %v631_v43 }
 0x222   :  { %v636_v50 = vmul.f32 %v836_v42, %v635_v45 }
 0x22a   :  { %v838_v47 = vpop.eup %837 }
 0x22b   :  { %v840_v48 = vpop.eup %839  ;;  %v633_v49 = vmul.f32 0.6931472, %v838_v47 }
 0x22c   :  { %v645_v53 = vmul.f32 %v840_v48, %v642_v51 }
 0x22d   :  { %v639_v54 = vsel %vm638_vm3, %v636_v50, %v633_v49 }
 0x22e   :  { %v640_v55 = vsub.f32 %v630_v52, %v639_v54  ;;  %v646_v56 = vmul.f32 %v645_v53, %v645_v53 }
 0x230   :  { %v647_v57 = vmul.f32 %v646_v56, %v640_v55 }
 0x232   :  { %v648_v58 = vsel %vm624_vm1, %v647_v57, 0.0 }
 0x233   :  { %649 = vadd.xlane.f32.xlu0 %v648_v58 }
 0x234   :  { %874 = shalt.err (!%p871_p12)
}
 0x235   :  { %s875_s20 = scalar_lea.hbm %s1025_s5, 16 }
 0x236   :  { %p876_p13 = scmp.ne.s32.totalorder %s1025_s5, %s875_s20  ;;  %p879_p0 = scmp.lt.u32.totalorder %s875_s20, %s1025_s5 }
 0x238   :  { %p881_p1 = pnand %p879_p0, %p876_p13 }
 0x23a   :  { %884 = shalt.err (!%p881_p1)
}
 0x23b   :  { %663 = dma.vmem_to_hbm [thread:$0]  %s661_s15, 16, %s1025_s5, [#allocation5]   ;;  %vm652_vm4 = vcmask 0  }
 0x23c   :  { %s921_s27 = smov [#allocation7]  }
 0x23d   :  { %s670_s28 = sshll.u32 %s921_s27, 4  ;;  %s671_s28 = int_to_ptr.vmem [resolvable:$true] %s670_s28 }
 0x23e   :  { %s885_s29 = scalar_lea.vmem %s671_s28, 16  ;;  %s889_s30 = scalar_lea.vmem %s671_s28, 32 }
 0x23f   :  { %p886_p2 = scmp.ne.s32.totalorder %s671_s28, %s885_s29  ;;  %p890_p3 = scmp.lt.s32.totalorder %s671_s28, %s671_s28 }
 0x240   :  { %p891_p4 = scmp.lt.s32.totalorder %s889_s30, %s885_s29 }
 0x242   :  { %p892_p5 = por %p891_p4, %p890_p3 }
 0x244   :  { %p893_p6 = pnand %p892_p5, %p886_p2 }
 0x2c0   :  { %v650_v59 = vpop.xlane.xlu0 %649 }
 0x2c1   :  { %v651_v60 = vmul.f32 -0.03125, %v650_v59 }
 0x2c3   :  { %653 = vst.msk [vmem:[#allocation7] sm:$0x1] %vm652_vm4, %v651_v60 }
 0x2c4   :  { %896 = shalt.err (!%p893_p6)
}
 0x2c5   :  { %s897_s9 = scalar_lea.hbm %s1026_s6, 16 }
 0x2c6   :  { %p898_p7 = scmp.ne.s32.totalorder %s1026_s6, %s897_s9  ;;  %p901_p8 = scmp.lt.u32.totalorder %s897_s9, %s1026_s6 }
 0x2c8   :  { %p903_p9 = pnand %p901_p8, %p898_p7 }
 0x2ca   :  { %906 = shalt.err (!%p903_p9)
}
 0x2cb   :  { %673 = dma.vmem_to_hbm [thread:$0]  %s671_s28, 16, %s1026_s6, [#allocation8]  }
 0x2cc   :  { %909 = dma.done.wait [#allocation5], 16  }
 0x2cd   :  { %910 = vsyncadd [#allocation5], 4294967280 }
 0x2ce   :  { %911 = dma.done.wait [#allocation8], 16  }
 0x2cf   :  { %912 = vsyncadd [#allocation8], 4294967280 }
 0x2d0   :  { %680 = vsyncpa [#allocation4], 1 }
 0x2d1   :  { %681 = vsyncpa [#allocation5], 1 }
 0x2d2   :  { %682 = vsyncpa [#allocation8], 1 }

</bundles_post_ra>
